<compile_context>
chip_gen: v7x
topology: tpu7x:2x2x1
jax: 0.10.0
libtpu: 0.0.40
codegen_flags: <defaults>
</compile_context>

<pallas_src>
import numpy as np
import jax
import jax.numpy as jnp
from jax.experimental import pallas as pl
from jax.experimental.pallas import tpu as pltpu

LOG_STD_MAX = 2.0
LOG_STD_MIN = -20.0
_HALF_LOG_2PI = float(0.5 * np.log(2.0 * np.pi))
_LOG2 = float(np.log(2.0))


def _round_up(x, m):
    return ((x + m - 1) // m) * m


def _vmem_capacity_bytes():
    try:
        return int(pltpu.get_tpu_info().vmem_capacity_bytes)
    except Exception:
        return 64 << 20  # conservative: v7x per-TensorCore VMEM


def _make_actor_kernel(*, deterministic, with_logprob, widths, action_dim,
                       compute_dtype):
    """Kernel specialized on the static deterministic / with_logprob flags.

    widths = [H1, ..., HL, 2*A]  (a_net layer widths + fused head width).
    """
    n_mats = len(widths)
    A = action_dim

    def kernel(*refs):
        if deterministic:
            state_ref = refs[0]
            w_refs = refs[1:1 + n_mats]
            b_ref = refs[1 + n_mats]
            eps = None
        else:
            state_ref, eps_ref = refs[0], refs[1]
            w_refs = refs[2:2 + n_mats]
            b_ref = refs[2 + n_mats]
            eps = eps_ref[...]
        out_ref = refs[-1]

        # a_net: Linear + ReLU per layer (hidden_activation == output_activation == ReLU)
        h = state_ref[...]
        for li in range(n_mats - 1):
            h = jnp.dot(h, w_refs[li][...], preferred_element_type=jnp.float32)
            h = h + b_ref[li:li + 1, :widths[li]]
            h = jnp.maximum(h, 0.0).astype(compute_dtype)

        # fused head: one matmul producing [mu | log_std]
        y = jnp.dot(h, w_refs[-1][...], preferred_element_type=jnp.float32)
        y = y + b_ref[n_mats - 1:n_mats, :2 * A]
        mu = y[:, :A]
        log_std = jnp.clip(y[:, A:], LOG_STD_MIN, LOG_STD_MAX)

        if deterministic:
            u = mu
        else:
            u = mu + jnp.exp(log_std) * eps
        a = jnp.tanh(u)

        if with_logprob:
            # Normal(mu, std).log_prob(u) summed over action dim; (u-mu)/std == eps.
            if deterministic:
                logp_gauss = -log_std - _HALF_LOG_2PI            # eps == 0
            else:
                logp_gauss = -0.5 * eps * eps - log_std - _HALF_LOG_2PI
            # tanh correction: 2*(log2 - u - softplus(-2u)), numerically stable form.
            neg2u = -2.0 * u
            softplus = jnp.maximum(neg2u, 0.0) + jnp.log1p(jnp.exp(-jnp.abs(neg2u)))
            corr = 2.0 * (_LOG2 - u - softplus)
            logp = jnp.sum(logp_gauss - corr, axis=1, keepdims=True)
            # packed output slab: [a | logp broadcast] -> single output stream.
            out_ref[:, :A] = a
            out_ref[:, A:] = jnp.broadcast_to(logp, a.shape)
        else:
            out_ref[...] = a

    return kernel


def init_actor_params(key, state_dim, action_dim, hid_shape):
    """PyTorch nn.Linear-style init (uniform +-1/sqrt(fan_in)). Raw layout [in, out]."""
    dims = [state_dim] + list(hid_shape)
    n_lin = (len(dims) - 1) + 2
    keys = jax.random.split(key, 2 * n_lin)

    def linear(kw, kb, fan_in, fan_out):
        bound = 1.0 / np.sqrt(fan_in)
        w = jax.random.uniform(kw, (fan_in, fan_out), jnp.float32, -bound, bound)
        b = jax.random.uniform(kb, (fan_out,), jnp.float32, -bound, bound)
        return w, b

    net, ki = [], 0
    for j in range(len(dims) - 1):
        w, b = linear(keys[ki], keys[ki + 1], dims[j], dims[j + 1])
        ki += 2
        net.append((w, b))
    wmu, bmu = linear(keys[ki], keys[ki + 1], dims[-1], action_dim)
    ki += 2
    wls, bls = linear(keys[ki], keys[ki + 1], dims[-1], action_dim)
    return {"net": net, "wmu": wmu, "bmu": bmu, "wls": wls, "bls": bls}


def pack_actor_params(raw, compute_dtype=jnp.float32):
    """Fuse mu/log_std heads into one weight and pack all biases into one slab."""
    net_ws = [w for (w, _) in raw["net"]]
    net_bs = [b.reshape(-1) for (_, b) in raw["net"]]
    A = int(raw["wmu"].shape[1])
    w_head = jnp.concatenate([raw["wmu"], raw["wls"]], axis=1)           # [H, 2A]
    b_head = jnp.concatenate([raw["bmu"].reshape(-1), raw["bls"].reshape(-1)])
    ws = [w.astype(compute_dtype) for w in net_ws] + [w_head.astype(compute_dtype)]
    bs = net_bs + [b_head]
    widths = [int(w.shape[1]) for w in ws]
    nb = max(widths)
    bpack = jnp.zeros((len(bs), nb), jnp.float32)
    for i, b in enumerate(bs):
        bpack = bpack.at[i, :b.shape[0]].set(b.astype(jnp.float32))
    return {
        "ws": ws,
        "bpack": bpack,
        "widths": widths,
        "state_dim": int(net_ws[0].shape[0]),
        "action_dim": A,
        "compute_dtype": compute_dtype,
    }


def actor_forward(packed, state, *, deterministic, with_logprob, key=None, eps=None):
    """Pallas equivalent of Actor.forward(state, deterministic, with_logprob)."""
    compute_dtype = packed["compute_dtype"]
    ws = packed["ws"]
    bpack = packed["bpack"]
    widths = packed["widths"]
    A = packed["action_dim"]
    B, S = state.shape
    assert S == packed["state_dim"]
    out_w = 2 * A if with_logprob else A

    # --- reparameterization noise (plain JAX, bit-reproducible rsample) ---
    if not deterministic:
        if eps is None:
            assert key is not None, "need `key` or `eps` when deterministic=False"
            eps = jax.random.normal(key, (B, A), dtype=jnp.float32)
        eps = eps.astype(jnp.float32)

    # --- generation-aware batch tile size (VMEM budget) ---
    dsz = np.dtype(compute_dtype).itemsize
    per_row = S * dsz + out_w * 4 + (0 if deterministic else A * 4)
    scratch_row = 8 * (sum(widths) + out_w)            # fp32 intermediates, ~2x margin
    resident = int(sum(int(np.prod(w.shape)) for w in ws)) * dsz + int(bpack.size) * 4
    phys = _vmem_capacity_bytes()
    budget = (phys * 3) // 8
    denom = max(2 * per_row + scratch_row, 1)
    tb_fit = max(8, ((budget - resident) // denom) // 8 * 8)
    tile_b = int(max(8, min(tb_fit, 512, _round_up(B, 8))))
    b_pad = _round_up(B, tile_b)
    grid = (b_pad // tile_b,)
    vmem_limit = int(min(max(resident + tile_b * denom + (16 << 20), 32 << 20),
                         phys // 2))

    # --- pad batch to a multiple of the tile ---
    x = state.astype(compute_dtype)
    if b_pad != B:
        x = jnp.pad(x, ((0, b_pad - B), (0, 0)))

    inputs = [x]
    in_specs = [pl.BlockSpec((tile_b, S), lambda i: (i, 0))]
    if not deterministic:
        e = eps if b_pad == B else jnp.pad(eps, ((0, b_pad - B), (0, 0)))
        inputs.append(e)
        in_specs.append(pl.BlockSpec((tile_b, A), lambda i: (i, 0)))
    for w in ws:                                    # weights: VMEM-resident across grid
        inputs.append(w)
        in_specs.append(pl.BlockSpec(w.shape, lambda i: (0, 0)))
    inputs.append(bpack)
    in_specs.append(pl.BlockSpec(bpack.shape, lambda i: (0, 0)))

    kernel = _make_actor_kernel(deterministic=deterministic,
                                with_logprob=with_logprob,
                                widths=widths, action_dim=A,
                                compute_dtype=compute_dtype)

    out = pl.pallas_call(
        kernel,
        grid=grid,
        in_specs=in_specs,
        out_specs=pl.BlockSpec((tile_b, out_w), lambda i: (i, 0)),
        out_shape=jax.ShapeDtypeStruct((b_pad, out_w), jnp.float32),
        compiler_params=pltpu.CompilerParams(
            dimension_semantics=("parallel",),
            vmem_limit_bytes=vmem_limit),
    )(*inputs)

    a = out[:B, :A]
    logp = out[:B, A:A + 1] if with_logprob else None
    return a, logp


def actor_forward_ref(raw, state, *, deterministic, with_logprob, eps=None):
    """Pure-JAX reference (mirrors the PyTorch module)."""
    hi = jax.lax.Precision.HIGHEST
    h = state
    for w, b in raw["net"]:
        h = jnp.maximum(jnp.dot(h, w, precision=hi) + b, 0.0)
    mu = jnp.dot(h, raw["wmu"], precision=hi) + raw["bmu"]
    log_std = jnp.clip(jnp.dot(h, raw["wls"], precision=hi) + raw["bls"],
                       LOG_STD_MIN, LOG_STD_MAX)
    std = jnp.exp(log_std)
    u = mu if deterministic else mu + std * eps
    a = jnp.tanh(u)
    if with_logprob:
        logp = jnp.sum(-0.5 * ((u - mu) / std) ** 2 - log_std - _HALF_LOG_2PI,
                       axis=1, keepdims=True)
        logp = logp - jnp.sum(2.0 * (_LOG2 - u - jax.nn.softplus(-2.0 * u)),
                              axis=1, keepdims=True)
    else:
        logp = None
    return a, logp


if __name__ == "__main__":
    B, STATE_DIM, ACTION_DIM = 8, 16, 8
    HID_SHAPE = (32, 32)

    root = jax.random.PRNGKey(0)
    k_param, k_state, k_noise, k_state2 = jax.random.split(root, 4)

    raw = init_actor_params(k_param, STATE_DIM, ACTION_DIM, HID_SHAPE)
    packed = pack_actor_params(raw, compute_dtype=jnp.float32)

    state = jax.random.normal(k_state, (B, STATE_DIM), dtype=jnp.float32)
    eps = jax.random.normal(k_noise, (B, ACTION_DIM), dtype=jnp.float32)

    # 1) stochastic + log-prob (SAC training path)
    a, logp = actor_forward(packed, state, deterministic=False,
                            with_logprob=True, eps=eps)
    jax.block_until_ready((a, logp))
    a_ref, logp_ref = actor_forward_ref(raw, state, deterministic=False,
                                        with_logprob=True, eps=eps)
    np.testing.assert_allclose(np.asarray(a), np.asarray(a_ref), rtol=5e-3, atol=5e-3)
    np.testing.assert_allclose(np.asarray(logp), np.asarray(logp_ref),
                               rtol=3e-2, atol=3e-2)

    # 2) deterministic, no log-prob (eval path): no eps input, no logp work/output
    a_det, logp_none = actor_forward(packed, state, deterministic=True,
                                     with_logprob=False)
    jax.block_until_ready(a_det)
    a_det_ref, _ = actor_forward_ref(raw, state, deterministic=True,
                                     with_logprob=False)
    np.testing.assert_allclose(np.asarray(a_det), np.asarray(a_det_ref),
                               rtol=5e-3, atol=5e-3)
    assert logp_none is None

    # 3) deterministic + log-prob with a ragged batch (exercises batch padding)
    B2 = 13
    state2 = jax.random.normal(k_state2, (B2, STATE_DIM), dtype=jnp.float32)
    a2, logp2 = actor_forward(packed, state2, deterministic=True, with_logprob=True)
    jax.block_until_ready((a2, logp2))
    a2_ref, logp2_ref = actor_forward_ref(raw, state2, deterministic=True,
                                          with_logprob=True)
    np.testing.assert_allclose(np.asarray(a2), np.asarray(a2_ref),
                               rtol=5e-3, atol=5e-3)
    np.testing.assert_allclose(np.asarray(logp2), np.asarray(logp2_ref),
                               rtol=3e-2, atol=3e-2)

    assert a.shape == (B, ACTION_DIM) and logp.shape == (B, 1)
    assert a_det.shape == (B, ACTION_DIM)
    assert a2.shape == (B2, ACTION_DIM) and logp2.shape == (B2, 1)
    assert bool(jnp.all(jnp.abs(a) <= 1.0))
    assert bool(jnp.all(jnp.isfinite(logp)))

    print("KERNEL_OK")
</pallas_src>

<mosaic_0001>
module attributes {stable_mosaic.version = 11 : i64} {
  func.func @kernel(%arg0: i32, %arg1: memref<8x16xf32, #tpu.memory_space<vmem>>, %arg2: memref<8x8xf32, #tpu.memory_space<vmem>>, %arg3: memref<16x32xf32, #tpu.memory_space<vmem>>, %arg4: memref<32x32xf32, #tpu.memory_space<vmem>>, %arg5: memref<32x16xf32, #tpu.memory_space<vmem>>, %arg6: memref<3x32xf32, #tpu.memory_space<vmem>>, %arg7: memref<8x16xf32, #tpu.memory_space<vmem>>) attributes {dimension_semantics = [#tpu.dimension_semantics<parallel>], iteration_bounds = array<i64: 1>, scalar_prefetch = 0 : i64, scratch_operands = 0 : i64, tpu.core_type = #tpu.core_type<tc>, window_params = [{transform_indices = @transform_0, window_bounds = array<i64: 8, 16>}, {transform_indices = @transform_1, window_bounds = array<i64: 8, 8>}, {pipeline_mode = #tpu.pipeline_mode<synchronous>, transform_indices = @transform_2, window_bounds = array<i64: 16, 32>}, {pipeline_mode = #tpu.pipeline_mode<synchronous>, transform_indices = @transform_3, window_bounds = array<i64: 32, 32>}, {pipeline_mode = #tpu.pipeline_mode<synchronous>, transform_indices = @transform_4, window_bounds = array<i64: 32, 16>}, {pipeline_mode = #tpu.pipeline_mode<synchronous>, transform_indices = @transform_5, window_bounds = array<i64: 3, 32>}, {transform_indices = @transform_6, window_bounds = array<i64: 8, 16>}]} {
    %c0 = arith.constant 0 : index
    %c0_0 = arith.constant 0 : index
    %0 = vector.load %arg2[%c0, %c0_0] : memref<8x8xf32, #tpu.memory_space<vmem>>, vector<8x8xf32>
    %c0_1 = arith.constant 0 : index
    %c0_2 = arith.constant 0 : index
    %1 = vector.load %arg1[%c0_1, %c0_2] : memref<8x16xf32, #tpu.memory_space<vmem>>, vector<8x16xf32>
    %c0_3 = arith.constant 0 : index
    %c0_4 = arith.constant 0 : index
    %2 = vector.load %arg3[%c0_3, %c0_4] : memref<16x32xf32, #tpu.memory_space<vmem>>, vector<16x32xf32>
    %cst = arith.constant dense<0.000000e+00> : vector<8x32xf32>
    %3 = tpu.matmul %1, %2, %cst {dimension_numbers = #tpu.dot_dimension_numbers<[1], [0], [0], [1], [0, 0, 1, 1], [], []>} : vector<8x16xf32>, vector<16x32xf32>, vector<8x32xf32> -> vector<8x32xf32>
    %c0_5 = arith.constant 0 : index
    %c0_6 = arith.constant 0 : index
    %4 = vector.load %arg6[%c0_5, %c0_6] : memref<3x32xf32, #tpu.memory_space<vmem>>, vector<1x32xf32>
    %5 = vector.broadcast %4 : vector<1x32xf32> to vector<8x32xf32>
    %6 = arith.addf %3, %5 : vector<8x32xf32>
    %cst_7 = arith.constant 0.000000e+00 : f32
    %7 = vector.broadcast %cst_7 : f32 to vector<8x32xf32>
    %8 = arith.maximumf %6, %7 : vector<8x32xf32>
    %c0_8 = arith.constant 0 : index
    %c0_9 = arith.constant 0 : index
    %9 = vector.load %arg4[%c0_8, %c0_9] : memref<32x32xf32, #tpu.memory_space<vmem>>, vector<32x32xf32>
    %cst_10 = arith.constant dense<0.000000e+00> : vector<8x32xf32>
    %10 = tpu.matmul %8, %9, %cst_10 {dimension_numbers = #tpu.dot_dimension_numbers<[1], [0], [0], [1], [0, 0, 1, 1], [], []>} : vector<8x32xf32>, vector<32x32xf32>, vector<8x32xf32> -> vector<8x32xf32>
    %c1 = arith.constant 1 : index
    %c0_11 = arith.constant 0 : index
    %11 = vector.load %arg6[%c1, %c0_11] : memref<3x32xf32, #tpu.memory_space<vmem>>, vector<1x32xf32>
    %12 = vector.broadcast %11 : vector<1x32xf32> to vector<8x32xf32>
    %13 = arith.addf %10, %12 : vector<8x32xf32>
    %cst_12 = arith.constant 0.000000e+00 : f32
    %14 = vector.broadcast %cst_12 : f32 to vector<8x32xf32>
    %15 = arith.maximumf %13, %14 : vector<8x32xf32>
    %c0_13 = arith.constant 0 : index
    %c0_14 = arith.constant 0 : index
    %16 = vector.load %arg5[%c0_13, %c0_14] : memref<32x16xf32, #tpu.memory_space<vmem>>, vector<32x16xf32>
    %cst_15 = arith.constant dense<0.000000e+00> : vector<8x16xf32>
    %17 = tpu.matmul %15, %16, %cst_15 {dimension_numbers = #tpu.dot_dimension_numbers<[1], [0], [0], [1], [0, 0, 1, 1], [], []>} : vector<8x32xf32>, vector<32x16xf32>, vector<8x16xf32> -> vector<8x16xf32>
    %c2 = arith.constant 2 : index
    %c0_16 = arith.constant 0 : index
    %18 = vector.load %arg6[%c2, %c0_16] : memref<3x32xf32, #tpu.memory_space<vmem>>, vector<1x16xf32>
    %19 = vector.broadcast %18 : vector<1x16xf32> to vector<8x16xf32>
    %20 = arith.addf %17, %19 : vector<8x16xf32>
    %21 = vector.extract_strided_slice %20 {offsets = [0, 0], sizes = [8, 8], strides = [1, 1]} : vector<8x16xf32> to vector<8x8xf32>
    %22 = vector.extract_strided_slice %20 {offsets = [0, 8], sizes = [8, 8], strides = [1, 1]} : vector<8x16xf32> to vector<8x8xf32>
    %cst_17 = arith.constant -2.000000e+01 : f32
    %cst_18 = arith.constant 2.000000e+00 : f32
    %23 = vector.broadcast %cst_17 : f32 to vector<8x8xf32>
    %24 = arith.maximumf %23, %22 : vector<8x8xf32>
    %25 = vector.broadcast %cst_18 : f32 to vector<8x8xf32>
    %26 = arith.minimumf %25, %24 : vector<8x8xf32>
    %27 = math.exp %26 : vector<8x8xf32>
    %28 = arith.mulf %27, %0 : vector<8x8xf32>
    %29 = arith.addf %21, %28 : vector<8x8xf32>
    %30 = math.tanh %29 : vector<8x8xf32>
    %cst_19 = arith.constant -5.000000e-01 : f32
    %31 = vector.broadcast %cst_19 : f32 to vector<8x8xf32>
    %32 = arith.mulf %31, %0 : vector<8x8xf32>
    %33 = arith.mulf %32, %0 : vector<8x8xf32>
    %34 = arith.subf %33, %26 : vector<8x8xf32>
    %cst_20 = arith.constant 0.918938517 : f32
    %35 = vector.broadcast %cst_20 : f32 to vector<8x8xf32>
    %36 = arith.subf %34, %35 : vector<8x8xf32>
    %cst_21 = arith.constant -2.000000e+00 : f32
    %37 = vector.broadcast %cst_21 : f32 to vector<8x8xf32>
    %38 = arith.mulf %37, %29 : vector<8x8xf32>
    %cst_22 = arith.constant 0.000000e+00 : f32
    %39 = vector.broadcast %cst_22 : f32 to vector<8x8xf32>
    %40 = arith.maximumf %38, %39 : vector<8x8xf32>
    %41 = math.absf %38 : vector<8x8xf32>
    %cst_23 = arith.constant 0.000000e+00 : f32
    %42 = vector.broadcast %cst_23 : f32 to vector<8x8xf32>
    %43 = arith.subf %42, %41 : vector<8x8xf32>
    %44 = math.exp %43 : vector<8x8xf32>
    %45 = math.log1p %44 : vector<8x8xf32>
    %46 = arith.addf %40, %45 : vector<8x8xf32>
    %cst_24 = arith.constant 0.693147182 : f32
    %47 = vector.broadcast %cst_24 : f32 to vector<8x8xf32>
    %48 = arith.subf %47, %29 : vector<8x8xf32>
    %49 = arith.subf %48, %46 : vector<8x8xf32>
    %cst_25 = arith.constant 2.000000e+00 : f32
    %50 = vector.broadcast %cst_25 : f32 to vector<8x8xf32>
    %51 = arith.mulf %50, %49 : vector<8x8xf32>
    %52 = arith.subf %36, %51 : vector<8x8xf32>
    %cst_26 = arith.constant dense<0.000000e+00> : vector<8xf32>
    %53 = vector.multi_reduction <add>, %52, %cst_26 [1] : vector<8x8xf32> to vector<8xf32>
    %54 = vector.shape_cast %53 : vector<8xf32> to vector<8x1xf32>
    %c0_27 = arith.constant 0 : index
    %c0_28 = arith.constant 0 : index
    %55 = vector.load %arg7[%c0_27, %c0_28] : memref<8x16xf32, #tpu.memory_space<vmem>>, vector<8x8xf32>
    tpu.vector_store %arg7[%c0_27, %c0_28], %30 {strides = array<i32>} : memref<8x16xf32, #tpu.memory_space<vmem>>, vector<8x8xf32>,
    %56 = vector.shape_cast %54 : vector<8x1xf32> to vector<8x1xf32>
    %57 = vector.broadcast %56 : vector<8x1xf32> to vector<8x8xf32>
    %c0_29 = arith.constant 0 : index
    %c8 = arith.constant 8 : index
    %58 = vector.load %arg7[%c0_29, %c8] : memref<8x16xf32, #tpu.memory_space<vmem>>, vector<8x8xf32>
    tpu.vector_store %arg7[%c0_29, %c8], %57 {strides = array<i32>} : memref<8x16xf32, #tpu.memory_space<vmem>>, vector<8x8xf32>,
    return
  }
  func.func @transform_0(%arg0: i32) -> (i32, i32) {
    %c0_i32 = arith.constant 0 : i32
    %c0_i32_0 = arith.constant 0 : i32
    return %arg0, %c0_i32 : i32, i32
  }
  func.func @transform_1(%arg0: i32) -> (i32, i32) {
    %c0_i32 = arith.constant 0 : i32
    %c0_i32_0 = arith.constant 0 : i32
    return %arg0, %c0_i32 : i32, i32
  }
  func.func @transform_2(%arg0: i32) -> (i32, i32) {
    %c0_i32 = arith.constant 0 : i32
    %c0_i32_0 = arith.constant 0 : i32
    %c0_i32_1 = arith.constant 0 : i32
    return %c0_i32, %c0_i32_0 : i32, i32
  }
  func.func @transform_3(%arg0: i32) -> (i32, i32) {
    %c0_i32 = arith.constant 0 : i32
    %c0_i32_0 = arith.constant 0 : i32
    %c0_i32_1 = arith.constant 0 : i32
    return %c0_i32, %c0_i32_0 : i32, i32
  }
  func.func @transform_4(%arg0: i32) -> (i32, i32) {
    %c0_i32 = arith.constant 0 : i32
    %c0_i32_0 = arith.constant 0 : i32
    %c0_i32_1 = arith.constant 0 : i32
    return %c0_i32, %c0_i32_0 : i32, i32
  }
  func.func @transform_5(%arg0: i32) -> (i32, i32) {
    %c0_i32 = arith.constant 0 : i32
    %c0_i32_0 = arith.constant 0 : i32
    %c0_i32_1 = arith.constant 0 : i32
    return %c0_i32, %c0_i32_0 : i32, i32
  }
  func.func @transform_6(%arg0: i32) -> (i32, i32) {
    %c0_i32 = arith.constant 0 : i32
    %c0_i32_0 = arith.constant 0 : i32
    return %arg0, %c0_i32 : i32, i32
  }
}

</mosaic_0001>

<bundles_post_ra>
// kernel: tpu_custom_call.1
= control target key start
LH: loop header
LB: loop body
LE: loop exit
PB: predicated region body
PF: predicated region fallthrough
CT: control target
= control target key end

     0   :  { %11 = vsyncpa [#allocation3], 0  ;;  %s591_s0 = inlined_call_operand.vmem [shape: f32[8,16], index: 0, kind: input, shape index: {}]   ;;  %s592_s1 = inlined_call_operand.hbm [shape: f32[8,8], index: 1, kind: input, shape index: {}]   ;;  %s593_s2 = inlined_call_operand.vmem [shape: f32[16,32], index: 2, kind: input, shape index: {}]   ;;  %s594_s3 = inlined_call_operand.vmem [shape: f32[32,32], index: 3, kind: input, shape index: {}]   ;;  %s595_s4 = inlined_call_operand.vmem [shape: f32[32,16], index: 4, kind: input, shape index: {}]   ;;  %s596_s5 = inlined_call_operand.vmem [shape: f32[3,32], index: 5, kind: input, shape index: {}]   ;;  %s597_s6 = inlined_call_operand.hbm [shape: f32[8,16], index: 6, kind: output, shape index: {}]  }
   0x1   :  { %12 = vsyncpa [#allocation4], 0  ;;  %s478_s21 = smov [#allocation2]   ;;  %s430_s25 = scalar_lea.hbm %s592_s1, 128 }
   0x2   :  { %s21_s22 = sshll.u32 %s478_s21, 4  ;;  %p431_p0 = scmp.ne.s32.totalorder %s592_s1, %s430_s25  ;;  %s22_s22 = int_to_ptr.vmem [resolvable:$true] %s21_s22 }
   0x3   :  { %p434_p1 = scmp.lt.u32.totalorder %s430_s25, %s592_s1 }
   0x5   :  { %p436_p2 = pnand %p434_p1, %p431_p0 }
   0x7   :  { %439 = shalt.err (!%p436_p2)
}
   0x8   :  { %s440_s30 = scalar_lea.vmem %s22_s22, 128  ;;  %p445_p4 = scmp.lt.s32.totalorder %s22_s22, %s22_s22 }
   0x9   :  { %p441_p3 = scmp.ne.s32.totalorder %s22_s22, %s440_s30  ;;  %p446_p5 = scmp.lt.s32.totalorder %s440_s30, %s440_s30 }
   0xb   :  { %p447_p6 = por %p446_p5, %p445_p4 }
   0xd   :  { %p448_p7 = pnand %p447_p6, %p441_p3 }
   0xf   :  { %451 = shalt.err (!%p448_p7)
}
  0x10   :  { %24 = dma.hbm_to_vmem [thread:$0]  %s592_s1, 128, %s22_s22, [#allocation3]  }
  0x11   :  { %474 = dma.done.wait [#allocation3], 128  }
  0x12   :  { %475 = vsyncadd [#allocation3], 4294967168  ;;  %v479_v0 = vmov 0.0|0.0   ;;  %vm480_vm0 = vmmov 0   ;;  %v481_v1 = vmov 0.0   ;;  %v38_v2 = vld [vmem:[%s593_s2] sm:$0xff] }
  0x13   :  { %400 = vmatprep.subr.bf16.mxu0 %v479_v0  ;;  %375 = vmatprep.mubr.msk.f32.mxu0 %vm480_vm0, %v481_v1  ;;  %v39_v3 = vld [vmem:[%s593_s2 + $0x8] sm:$0xff]  ;;  %v120_v5 = vld [vmem:[%s594_s3] sm:$0xff]  ;;  %vm45_vm1 = vcmask 130048   ;;  %v122_v9 = vld [vmem:[%s594_s3 + $0x10] sm:$0xff]  ;;  %vm129_vm2 = vcmask 261120   ;;  %s482_s29 = smov 8  }
  0x14   :  { %403 = vmatprep.subr.bf16.mxu1 %v479_v0  ;;  %386 = vmatprep.mubr.msk.f32.mxu1 %vm480_vm0, %v481_v1  ;;  %v401_v4 = vpack.c.bf16 %v39_v3, %v38_v2  ;;  %v121_v6 = vld [vmem:[%s594_s3 + $0x8] sm:$0xff]  ;;  %v37_v8 = vld [vmem:[%s591_s0] sm:$0xff]  ;;  %v123_v10 = vld [vmem:[%s594_s3 + $0x18] sm:$0xff]  ;;  %vm329_vm3 = vcmask 64512   ;;  %vm334_vm5 = vcmask 130112  }
  0x15   :  { %v404_v7 = vpack.c.bf16 %v121_v6, %v120_v5  ;;  %v407_v11 = vpack.c.bf16 %v123_v10, %v122_v9  ;;  %v204_v12 = vld [vmem:[%s595_s4] sm:$0xff]  ;;  %v205_v13 = vld [vmem:[%s595_s4 + $0x8] sm:$0xff]  ;;  %v206_v20 = vld [vmem:[%s595_s4 + $0x10] sm:$0xff] }
  0x16   :  { %402 = vmatpush3.bf16.msra.mxu0 %v401_v4  ;;  %v410_v14 = vpack.c.bf16 %v205_v13, %v204_v12  ;;  %v351_v15 = vld [vmem:[%s596_s5] ss:$0 sm:$0xff]  ;;  %v207_v21 = vld [vmem:[%s595_s4 + $0x18] sm:$0xff]  ;;  %v353_v24 = vld [vmem:[%s596_s5 + $0x1] ss:$0 sm:$0xff]  ;;  %s483_s4 = smov 120  }
  0x17   :  { %405 = vmatpush3.bf16.msra.mxu1 %v404_v7  ;;  %409 = vmatprep.subr.bf16.mxu0 %v479_v0  ;;  %v413_v22 = vpack.c.bf16 %v207_v21, %v206_v20  ;;  %v36_v23 = vld [vmem:[#allocation2] sm:$0xff] }
  0x18   :  { %406 = vmatprep.subr.bf16.mxu1 %v479_v0  ;;  %291 = vrot.lane.b32.xlu0 %v36_v23, %s482_s29  ;;  %v355_v29 = vld [vmem:[%s596_s5 + $0x2] ss:$0 sm:$0xff]  ;;  %v301_v49 = vmul.f32 -0.5, %v36_v23  ;;  %s484_s5 = smov [#allocation5]  }
  0x19   :  { %376 = vmatmul.mubr.msk.f32.vlgmr.msra.gmra.mrb[0].mxu0 %vm45_vm1, %v37_v8  ;;  %s342_s10 = sshll.u32 %s484_s5, 4  ;;  %s343_s10 = int_to_ptr.vmem [resolvable:$true] %s342_s10 }
  0x1a   :  { %397 = vmatprep.mubr.msk.f32.mxu0 %vm480_vm0, %v481_v1  ;;  %411 = vmatpush3.bf16.msra.mxu0 %v410_v14  ;;  %v302_v53 = vmul.f32 %v301_v49, %v36_v23  ;;  %s452_s11 = scalar_lea.vmem %s343_s10, 128  ;;  %p457_p9 = scmp.lt.s32.totalorder %s343_s10, %s343_s10 }
  0x1b   :  { %408 = vmatpush3.bf16.msra.mxu1 %v407_v11  ;;  %412 = vmatprep.subr.bf16.mxu0 %v479_v0  ;;  %p453_p8 = scmp.ne.s32.totalorder %s343_s10, %s452_s11  ;;  %p458_p10 = scmp.lt.s32.totalorder %s452_s11, %s452_s11 }
  0x1d   :  { %p459_p11 = por %p458_p10, %p457_p9 }
  0x1e   :  { %414 = vmatpush3.bf16.msra.mxu0 %v413_v22 }
  0x1f   :  { %p460_p12 = pnand %p459_p11, %p453_p8 }
  0x8a   :  { %v292_v36 = vpop.permute.xlu0 %291 }
  0xec   :  { %v115_v16 = vpop.f32.mrb[0].mxu0 }
  0xed   :  { %v116_v17 = vadd.f32 %v351_v15, %v115_v16  ;;  %v377_v18 = vpop.f32.mrb[1].mxu0 }
  0xef   :  { %v119_v19 = vmax.f32 %v116_v17, 0.0 }
  0xf1   :  { %387 = vmatmul.mubr.msk.f32.vlgmr.msra.gmra.mrb[0].mxu1 %vm129_vm2, %v119_v19 }
 0x1c4   :  { %v199_v25 = vpop.f32.mrb[0].mxu1 }
 0x1c5   :  { %v200_v26 = vadd.f32 %v353_v24, %v199_v25  ;;  %v388_v27 = vpop.f32.mrb[1].mxu1 }
 0x1c7   :  { %v203_v28 = vmax.f32 %v200_v26, 0.0 }
 0x1c9   :  { %398 = vmatmul.mubr.msk.f32.vlgmr.msra.gmra.mrb[2].mxu0 %vm129_vm2, %v203_v28 }
 0x29c   :  { %v282_v30 = vpop.f32.mrb[2].mxu0 }
 0x29d   :  { %v283_v31 = vadd.f32 %v355_v29, %v282_v30  ;;  %v399_v32 = vpop.f32.mrb[3].mxu0 }
 0x29f   :  { %v286_v33 = vmax.f32 %v283_v31, -20.0 }
 0x2a1   :  { %v287_v34 = vmin.f32 %v286_v33, 2.0 }
 0x2a3   :  { %304 = vrot.lane.b32.xlu1 %v287_v34, %s483_s4  ;;  %v288_v35 = vmul.f32 1.442695, %v287_v34 }
 0x2a5   :  { %422 = vpow2.f32 %v288_v35 }
 0x2af   :  { %v423_v37 = vpop.eup %422 }
 0x2b0   :  { %v294_v38 = vmul.f32 %v423_v37, %v292_v36 }
 0x2b2   :  { %296 = vrot.lane.b32.xlu0 %v294_v38, %s483_s4 }
 0x315   :  { %v305_v54 = vpop.permute.xlu1 %304 }
 0x316   :  { %v307_v59 = vsub.f32 %v302_v53, %v305_v54 }
 0x318   :  { %v357_v63 = vadd.f32 -0.9189385, %v307_v59 }
 0x324   :  { %v297_v39 = vpop.permute.xlu0 %296 }
 0x325   :  { %v299_v40 = vadd.f32 %v297_v39, %v283_v31 }
 0x327   :  { %424 = vtanh.f32 %v299_v40  ;;  %v309_v41 = vmul.f32 -2.0, %v299_v40  ;;  %v325_v60 = vsub.f32 0.6931472, %v299_v40 }
 0x329   :  { %v311_v42 = vand.u32 2147483647, %v309_v41  ;;  %v310_v57 = vmax.f32 %v309_v41, 0.0 }
 0x32b   :  { %v312_v43 = vsub.f32 0.0, %v311_v42 }
 0x32d   :  { %v313_v44 = vmul.f32 1.442695, %v312_v43 }
 0x32f   :  { %426 = vpow2.f32 %v313_v44 }
 0x331   :  { %v425_v45 = vpop.eup %424 }
 0x332   :  { %333 = vst.msk [vmem:[#allocation5] sm:$0xff] %vm329_vm3, %v425_v45 }
 0x339   :  { %v427_v46 = vpop.eup %426 }
 0x33a   :  { %v315_v47 = vadd.f32 1.0, %v427_v46  ;;  %v318_v48 = vmul.f32 -0.5, %v427_v46  ;;  %v321_v51 = vand.u32 2147483647, %v427_v46 }
 0x33c   :  { %428 = vlog2.f32 %v315_v47  ;;  %v319_v50 = vadd.f32 1.0, %v318_v48  ;;  %vm322_vm4 = vcmp.lt.f32.partialorder %v321_v51, 0.0004427343 }
 0x33e   :  { %v320_v56 = vmul.f32 %v427_v46, %v319_v50 }
 0x346   :  { %v429_v52 = vpop.eup %428 }
 0x347   :  { %v317_v55 = vmul.f32 0.6931472, %v429_v52 }
 0x349   :  { %v323_v58 = vsel %vm322_vm4, %v320_v56, %v317_v55 }
 0x34a   :  { %v324_v61 = vadd.f32 %v323_v58, %v310_v57 }
 0x34c   :  { %v326_v62 = vsub.f32 %v325_v60, %v324_v61 }
 0x34e   :  { %v327_v0 = vmul.f32 2.0, %v326_v62 }
 0x350   :  { %v328_v1 = vsub.f32 %v357_v63, %v327_v0 }
 0x352   :  { %v330_v2 = vsel %vm329_vm3, %v328_v1, 0.0 }
 0x353   :  { %331 = vadd.xlane.f32.xlu1 %v330_v2 }
 0x3e0   :  { %v332_v3 = vpop.xlane.xlu1 %331 }
 0x3e1   :  { %335 = vst.msk [vmem:[#allocation5] sm:$0xff] %vm334_vm5, %v332_v3 }
 0x3e2   :  { %463 = shalt.err (!%p460_p12)
}
 0x3e3   :  { %s464_s13 = scalar_lea.hbm %s597_s6, 128 }
 0x3e4   :  { %p465_p13 = scmp.ne.s32.totalorder %s597_s6, %s464_s13  ;;  %p468_p0 = scmp.lt.u32.totalorder %s464_s13, %s597_s6 }
 0x3e6   :  { %p470_p1 = pnand %p468_p0, %p465_p13 }
 0x3e8   :  { %473 = shalt.err (!%p470_p1)
}
 0x3e9   :  { %345 = dma.vmem_to_hbm [thread:$0]  %s343_s10, 128, %s597_s6, [#allocation4]  }
 0x3ea   :  { %476 = dma.done.wait [#allocation4], 128  }
 0x3eb   :  { %477 = vsyncadd [#allocation4], 4294967168 }
 0x3ec   :  { %349 = vsyncpa [#allocation3], 1 }
 0x3ed   :  { %350 = vsyncpa [#allocation4], 1 }

</bundles_post_ra>
